<compile_context>
chip_gen: v5e
topology: v5e:2x2
jax: 0.10.0
libtpu: 0.0.40
codegen_flags: <defaults>
</compile_context>

<pallas_src>
import math
import functools

import jax
import jax.numpy as jnp
from jax.experimental import pallas as pl
from jax.experimental.pallas import tpu as pltpu


# --------------------------------------------------------------------------
# helpers
# --------------------------------------------------------------------------

def _min_sublane(dtype) -> int:
    # f32 -> 8, bf16 -> 16, int8/fp8 -> 32 (sub-32-bit dtypes pack along sublanes).
    return max(8, 32 // jnp.dtype(dtype).itemsize)


def _round_tile(tile_n: int, dtype) -> int:
    m = _min_sublane(dtype)
    return max(m, ((tile_n + m - 1) // m) * m)


# --------------------------------------------------------------------------
# Fast path: table resident in VMEM, one-hot MXU gather + scale
# --------------------------------------------------------------------------

def _embed_onehot_kernel(ids_ref, table_ref, out_ref, *, scale):
    """ids_ref: (tile_n, 1) int32; table_ref: (V, E) resident; out: (tile_n, E)."""
    ids = ids_ref[...]                                   # (tile_n, 1)
    tile_n = ids.shape[0]
    vocab = table_ref.shape[0]
    onehot = (ids == jax.lax.broadcasted_iota(jnp.int32, (tile_n, vocab), 1))
    onehot = onehot.astype(table_ref.dtype)
    acc = jnp.dot(onehot, table_ref[...], preferred_element_type=jnp.float32)
    out_ref[...] = (acc * scale).astype(out_ref.dtype)


def _embed_small_table(ids, emb_table, scale, tile_n):
    (n,) = ids.shape
    vocab, emb = emb_table.shape
    tile_n = _round_tile(tile_n, emb_table.dtype)

    n_tiles = pl.cdiv(n, tile_n)
    n_pad = n_tiles * tile_n
    if n_pad != n:
        ids = jnp.concatenate([ids, jnp.zeros((n_pad - n,), jnp.int32)])
    ids2 = ids.reshape(n_pad, 1)

    itemsize = jnp.dtype(emb_table.dtype).itemsize
    needed = (2 * vocab * emb * itemsize        # table (worst case double-buffered)
              + 2 * tile_n * 4                  # ids blocks
              + 2 * tile_n * emb * itemsize     # double-buffered out blocks
              + tile_n * vocab * 4              # one-hot temp
              + (4 << 20))                      # headroom
    vmem_limit = int(min(max(needed, 32 << 20), 64 << 20))

    out = pl.pallas_call(
        functools.partial(_embed_onehot_kernel, scale=scale),
        out_shape=jax.ShapeDtypeStruct((n_pad, emb), emb_table.dtype),
        grid=(n_tiles,),
        in_specs=[
            pl.BlockSpec((tile_n, 1), lambda i: (i, 0)),        # per-tile ids
            pl.BlockSpec((vocab, emb), lambda i: (0, 0)),       # table, resident
        ],
        out_specs=pl.BlockSpec((tile_n, emb), lambda i: (i, 0)),
        compiler_params=pltpu.CompilerParams(
            dimension_semantics=("parallel",),    # tiles independent -> megacore OK
            vmem_limit_bytes=vmem_limit,
        ),
    )(ids2, emb_table)
    return out[:n]


# --------------------------------------------------------------------------
# Large-vocab path: table stays in HBM, manual double-buffered row gather
# --------------------------------------------------------------------------

def _embed_gather_kernel(ids_ref, emb_hbm, out_ref, rows_vmem, sems, *,
                         scale, tile_n, n_inner):
    """One grid step gathers tile_n embedding rows from HBM and scales them.

    ids_ref   : SMEM (n_pad,) int32      scalar-prefetched token ids
    emb_hbm   : HBM  (V, E)              embedding table (never VMEM-resident)
    out_ref   : VMEM (tile_n, E)         auto-pipelined output tile
    rows_vmem : VMEM (2, tile_n, E)      double-buffered gather landing zone
    sems      : DMA semaphores (2,)      one per buffer slot
    """
    o = pl.program_id(0)
    i = pl.program_id(1)
    tile_idx = o * n_inner + i
    slot = i & 1

    def fetch(t_idx, slot_idx):
        base = t_idx * tile_n

        def body(r, carry):
            row = ids_ref[base + r]
            pltpu.make_async_copy(
                emb_hbm.at[pl.ds(row, 1)],
                rows_vmem.at[slot_idx].at[pl.ds(r, 1)],
                sems.at[slot_idx],
            ).start()
            return carry

        jax.lax.fori_loop(0, tile_n, body, 0, unroll=8)

    # Prime the pipeline on the first inner step of this outer slice.
    @pl.when(i == 0)
    def _():
        fetch(tile_idx, slot)

    # Prefetch the next tile's rows into the other slot (SMEM id reads happen
    # before any .wait(), keeping sst->sld forwarding intact).
    @pl.when(i + 1 < n_inner)
    def _():
        fetch(tile_idx + 1, 1 - slot)

    # Single wait covering all tile_n row copies landing in this slot
    # (DMA semaphores count bytes; src ref of the wait descriptor is unused).
    pltpu.make_async_copy(
        rows_vmem.at[slot], rows_vmem.at[slot], sems.at[slot],
    ).wait()

    # Fused sqrt(emb_size) scaling on the VPU; lane-dense store when E % 128 == 0.
    rows = rows_vmem[slot].astype(jnp.float32)
    out_ref[...] = (rows * scale).astype(out_ref.dtype)


def _embed_hbm_gather(ids, emb_table, scale, tile_n, *, max_ids_per_call=65536):
    (n,) = ids.shape
    vocab, emb = emb_table.shape
    tile_n = _round_tile(tile_n, emb_table.dtype)

    # SMEM guard: chunk long token streams so the scalar-prefetched id vector
    # stays bounded regardless of N.
    if n > max_ids_per_call:
        outs = []
        for s in range(0, n, max_ids_per_call):
            outs.append(_embed_hbm_gather(ids[s:s + max_ids_per_call], emb_table,
                                          scale, tile_n,
                                          max_ids_per_call=max_ids_per_call))
        return jnp.concatenate(outs, axis=0)

    n_tiles = pl.cdiv(n, tile_n)
    # Outer "parallel" axis lets v7x's two TensorCores run independent prefetch
    # chains; single-TC chips (v5e/v6e) just see one extra (cheap) loop level.
    n_outer = 2 if n_tiles >= 2 else 1
    n_inner = pl.cdiv(n_tiles, n_outer)
    n_tiles = n_outer * n_inner
    n_pad = n_tiles * tile_n
    if n_pad != n:
        ids = jnp.concatenate([ids, jnp.zeros((n_pad - n,), jnp.int32)])

    itemsize = jnp.dtype(emb_table.dtype).itemsize
    needed = (2 * tile_n * emb * itemsize       # gather landing zone (2 slots)
              + 2 * tile_n * emb * itemsize     # double-buffered out blocks
              + (4 << 20))                      # headroom
    # NOTE: for very large E, shrink tile_n instead of raising this past 64 MiB.
    vmem_limit = int(min(max(needed, 32 << 20), 64 << 20))

    out = pl.pallas_call(
        functools.partial(_embed_gather_kernel, scale=scale, tile_n=tile_n,
                          n_inner=n_inner),
        out_shape=jax.ShapeDtypeStruct((n_pad, emb), emb_table.dtype),
        grid_spec=pltpu.PrefetchScalarGridSpec(
            num_scalar_prefetch=1,                         # ids land in SMEM
            grid=(n_outer, n_inner),
            in_specs=[pl.BlockSpec(memory_space=pl.ANY)],  # table stays in HBM
            out_specs=pl.BlockSpec((tile_n, emb),
                                   lambda o, i, ids: (o * n_inner + i, 0)),
            scratch_shapes=[
                pltpu.VMEM((2, tile_n, emb), emb_table.dtype),
                pltpu.SemaphoreType.DMA((2,)),
            ],
        ),
        compiler_params=pltpu.CompilerParams(
            dimension_semantics=("parallel", "arbitrary"),
            vmem_limit_bytes=vmem_limit,
        ),
    )(ids, emb_table)
    return out[:n]


# --------------------------------------------------------------------------
# Public wrapper (forward of TokenEmbedding)
# --------------------------------------------------------------------------

def token_embedding(tokens, emb_table, *, tile_n=128,
                    vmem_table_budget=8 << 20, force_hbm_gather=False):
    """tokens: [seq_len, batch] int -> [seq_len, batch, emb] (table dtype)."""
    seq_len, batch = tokens.shape
    vocab, emb = emb_table.shape
    n = seq_len * batch
    scale = math.sqrt(emb)

    # Clamp ids on the host: an out-of-range id can never become an unchecked
    # out-of-bounds DMA / gather inside the kernel.
    # TODO(synk): PyTorch nn.Embedding raises on out-of-range ids; here we clamp.
    ids = jnp.clip(tokens.reshape(n).astype(jnp.int32), 0, vocab - 1)

    table_bytes = vocab * emb * jnp.dtype(emb_table.dtype).itemsize
    small_table = (not force_hbm_gather
                   and table_bytes <= vmem_table_budget
                   and vocab <= 4096)

    if small_table:
        out_flat = _embed_small_table(ids, emb_table, scale, tile_n)
    else:
        out_flat = _embed_hbm_gather(ids, emb_table, scale, tile_n)

    return out_flat.reshape(seq_len, batch, emb)


# --------------------------------------------------------------------------
# Demo / self-check
# --------------------------------------------------------------------------

if __name__ == "__main__":
    # Small shapes consistent with the module's forward:
    #   tokens: [seq_len=8, batch=2]; emb_size=128 (multiple of 128 -> lane-dense).
    vocab_size, emb_size = 256, 128
    seq_len, batch = 8, 2

    key = jax.random.PRNGKey(0)
    k_emb, k_tok = jax.random.split(key)

    # nn.Embedding default init ~ N(0, 1), deterministic here via PRNGKey(0).
    emb_table = jax.random.normal(k_emb, (vocab_size, emb_size), dtype=jnp.float32)
    tokens = jax.random.randint(k_tok, (seq_len, batch), 0, vocab_size,
                                dtype=jnp.int32)

    ref = jnp.take(emb_table, tokens, axis=0) * math.sqrt(emb_size)

    # 1) Fast path: table resident in VMEM, one-hot MXU gather.
    out_fast = jax.block_until_ready(token_embedding(tokens, emb_table))
    assert out_fast.shape == (seq_len, batch, emb_size)
    assert jnp.allclose(out_fast, ref, atol=1e-5, rtol=1e-5)

    # 2) Large-vocab path: manual HBM row-gather DMA (forced here for coverage).
    out_gather = jax.block_until_ready(
        token_embedding(tokens, emb_table, force_hbm_gather=True))
    assert out_gather.shape == (seq_len, batch, emb_size)
    assert jnp.allclose(out_gather, ref, atol=1e-5, rtol=1e-5)

    print("KERNEL_OK")
</pallas_src>

<mosaic_0001>
module attributes {stable_mosaic.version = 11 : i64} {
  func.func @_embed_onehot_kernel(%arg0: i32, %arg1: memref<128x1xi32, #tpu.memory_space<vmem>>, %arg2: memref<256x128xf32, #tpu.memory_space<vmem>>, %arg3: memref<128x128xf32, #tpu.memory_space<vmem>>) attributes {dimension_semantics = [#tpu.dimension_semantics<parallel>], iteration_bounds = array<i64: 1>, scalar_prefetch = 0 : i64, scratch_operands = 0 : i64, tpu.core_type = #tpu.core_type<tc>, window_params = [{transform_indices = @transform_0, window_bounds = array<i64: 128, 1>}, {pipeline_mode = #tpu.pipeline_mode<synchronous>, transform_indices = @transform_1, window_bounds = array<i64: 256, 128>}, {transform_indices = @transform_2, window_bounds = array<i64: 128, 128>}]} {
    %c0 = arith.constant 0 : index
    %c0_0 = arith.constant 0 : index
    %0 = vector.load %arg1[%c0, %c0_0] : memref<128x1xi32, #tpu.memory_space<vmem>>, vector<128x1xi32>
    %1 = tpu.iota {dimensions = array<i32: 1>} : vector<128x256xi32>
    %2 = vector.broadcast %0 : vector<128x1xi32> to vector<128x256xi32>
    %3 = arith.cmpi eq, %2, %1 : vector<128x256xi32>
    %4 = arith.extui %3 : vector<128x256xi1> to vector<128x256xi32>
    %5 = arith.sitofp %4 : vector<128x256xi32> to vector<128x256xf32>
    %c0_1 = arith.constant 0 : index
    %c0_2 = arith.constant 0 : index
    %6 = vector.load %arg2[%c0_1, %c0_2] : memref<256x128xf32, #tpu.memory_space<vmem>>, vector<256x128xf32>
    %cst = arith.constant dense<0.000000e+00> : vector<128x128xf32>
    %7 = tpu.matmul %5, %6, %cst {dimension_numbers = #tpu.dot_dimension_numbers<[1], [0], [0], [1], [0, 0, 1, 1], [], []>} : vector<128x256xf32>, vector<256x128xf32>, vector<128x128xf32> -> vector<128x128xf32>
    %cst_3 = arith.constant 11.3137083 : f32
    %8 = vector.broadcast %cst_3 : f32 to vector<128x128xf32>
    %9 = arith.mulf %7, %8 : vector<128x128xf32>
    %c0_4 = arith.constant 0 : index
    %c0_5 = arith.constant 0 : index
    %10 = vector.load %arg3[%c0_4, %c0_5] : memref<128x128xf32, #tpu.memory_space<vmem>>, vector<128x128xf32>
    tpu.vector_store %arg3[%c0_4, %c0_5], %9 {strides = array<i32>} : memref<128x128xf32, #tpu.memory_space<vmem>>, vector<128x128xf32>,
    return
  }
  func.func @transform_0(%arg0: i32) -> (i32, i32) {
    %c0_i32 = arith.constant 0 : i32
    %c0_i32_0 = arith.constant 0 : i32
    return %arg0, %c0_i32 : i32, i32
  }
  func.func @transform_1(%arg0: i32) -> (i32, i32) {
    %c0_i32 = arith.constant 0 : i32
    %c0_i32_0 = arith.constant 0 : i32
    %c0_i32_1 = arith.constant 0 : i32
    return %c0_i32, %c0_i32_0 : i32, i32
  }
  func.func @transform_2(%arg0: i32) -> (i32, i32) {
    %c0_i32 = arith.constant 0 : i32
    %c0_i32_0 = arith.constant 0 : i32
    return %arg0, %c0_i32 : i32, i32
  }
}

</mosaic_0001>

<bundles_post_ra>
// kernel: tpu_custom_call.1
= control target key start
LH: loop header
LB: loop body
LE: loop exit
PB: predicated region body
PF: predicated region fallthrough
CT: control target
= control target key end

     0   :  { %7 = vsyncpa [#allocation3], 0  ;;  %s711_s0 = inlined_call_operand.vmem [shape: s32[128,1], index: 0, kind: input, shape index: {}]   ;;  %s712_s1 = inlined_call_operand.hbm [shape: f32[256,128], index: 1, kind: input, shape index: {}]   ;;  %s713_s2 = inlined_call_operand.hbm [shape: f32[128,128], index: 2, kind: output, shape index: {}]  }
   0x1   :  { %8 = vsyncpa [#allocation4], 0  ;;  %s15_s11 = sshll.u32 %s712_s1, 4  ;;  %s561_s12 = smov [#allocation2]   ;;  %s16_s11 = int_to_ptr.hbm [resolvable:$true] %s15_s11 }
   0x2   :  { %s17_s13 = sshll.u32 %s561_s12, 4  ;;  %s562_s14 = smov 128   ;;  %s18_s13 = int_to_ptr.vmem [resolvable:$true] %s17_s13 }
   0x3   :  { %s563_s15 = smov 8  }
   0x4   :  { %23 = dma.hbm_to_vmem [thread:$0]  %s16_s11, 4096, %s18_s13, [#allocation3], %s562_s14, %s562_s14, %s563_s15  }
   0x5   :  { %557 = dma.done.wait [#allocation3], 4096  }
   0x6   :  { %558 = vsyncadd [#allocation3], 4294963200  ;;  %v564_v0 = vmov 0   ;;  %v37_v1 = vld [vmem:[%s711_s0 + $0x48] sm:$0xff]  ;;  %v36_v2 = vld [vmem:[%s711_s0 + $0x40] sm:$0xff]  ;;  %v44_v49 = vlaneseq  ;;  %v565_v53 = vmov 1.0  }
   0x7   :  { %507 = vset.pattern.permute.xlu1 %v564_v0  ;;  %506 = vset.pattern.permute.xlu0 %v564_v0  ;;  %v38_v3 = vld [vmem:[%s711_s0 + $0x50] sm:$0xff]  ;;  %v29_v4 = vld [vmem:[%s711_s0 + $0x8] sm:$0xff]  ;;  %v28_v5 = vld [vmem:[%s711_s0] sm:$0xff]  ;;  %s391_s23 = sshll.u32 %s713_s2, 4  ;;  %s392_s23 = int_to_ptr.hbm [resolvable:$true] %s391_s23 }
   0x8   :  { %508 = vset.pattern.permute.xlu2 %v564_v0  ;;  %75 = vperm.xlu1 %507, %v37_v1   ;;  %v30_v6 = vld [vmem:[%s711_s0 + $0x10] sm:$0xff]  ;;  %v206_v7 = vld [vmem:[#allocation2 + $0x78] sm:$0xff]  ;;  %v204_v11 = vld [vmem:[#allocation2 + $0x68] sm:$0xff]  ;;  %v636_v50 = vand.u32 127, %v44_v49 }
   0x9   :  { %72 = vperm.xlu0 %506, %v36_v2   ;;  %78 = vperm.xlu2 %508, %v38_v3   ;;  %v222_v8 = vld [vmem:[#allocation2 + $0xf8] sm:$0xff]  ;;  %v205_v9 = vld [vmem:[#allocation2 + $0x70] sm:$0xff]  ;;  %v220_v12 = vld [vmem:[#allocation2 + $0xe8] sm:$0xff] }
   0xa   :  { %468 = vmatpush.msra.mxu2 %v206_v7  ;;  %v221_v10 = vld [vmem:[#allocation2 + $0xf0] sm:$0xff]  ;;  %484 = vmatpush.msra.mxu3 %v222_v8  ;;  %v203_v13 = vld [vmem:[#allocation2 + $0x60] sm:$0xff]  ;;  %v31_v14 = vld [vmem:[%s711_s0 + $0x18] sm:$0xff]  ;;  %v639_v51 = vadd.s32 128, %v636_v50 }
   0xb   :  { %223 = vmatpush.msra.mxu0 %v206_v7  ;;  %288 = vmatpush.msra.mxu1 %v222_v8  ;;  %v39_v15 = vld [vmem:[%s711_s0 + $0x58] sm:$0xff]  ;;  %v40_v16 = vld [vmem:[%s711_s0 + $0x60] sm:$0xff]  ;;  %v201_v20 = vld [vmem:[#allocation2 + $0x50] sm:$0xff] }
   0xc   :  { %469 = vmatpush.msra.mxu2 %v205_v9  ;;  %485 = vmatpush.msra.mxu3 %v221_v10  ;;  %v219_v17 = vld [vmem:[#allocation2 + $0xe0] sm:$0xff]  ;;  %v202_v18 = vld [vmem:[#allocation2 + $0x58] sm:$0xff]  ;;  %v217_v21 = vld [vmem:[#allocation2 + $0xd0] sm:$0xff] }
   0xd   :  { %224 = vmatpush.msra.mxu0 %v205_v9  ;;  %289 = vmatpush.msra.mxu1 %v221_v10  ;;  %v218_v19 = vld [vmem:[#allocation2 + $0xd8] sm:$0xff]  ;;  %v200_v22 = vld [vmem:[#allocation2 + $0x48] sm:$0xff]  ;;  %v32_v25 = vld [vmem:[%s711_s0 + $0x20] sm:$0xff] }
   0xe   :  { %470 = vmatpush.msra.mxu2 %v204_v11  ;;  %486 = vmatpush.msra.mxu3 %v220_v12  ;;  %v216_v23 = vld [vmem:[#allocation2 + $0xc8] sm:$0xff]  ;;  %v34_v27 = vld [vmem:[%s711_s0 + $0x30] sm:$0xff]  ;;  %v43_v29 = vld [vmem:[%s711_s0 + $0x78] sm:$0xff] }
   0xf   :  { %225 = vmatpush.msra.mxu0 %v204_v11  ;;  %290 = vmatpush.msra.mxu1 %v220_v12  ;;  %v41_v24 = vld [vmem:[%s711_s0 + $0x68] sm:$0xff]  ;;  %v42_v28 = vld [vmem:[%s711_s0 + $0x70] sm:$0xff]  ;;  %v35_v30 = vld [vmem:[%s711_s0 + $0x38] sm:$0xff] }
  0x10   :  { %51 = vperm.xlu1 %507, %v29_v4   ;;  %471 = vmatpush.msra.mxu2 %v203_v13  ;;  %v33_v26 = vld [vmem:[%s711_s0 + $0x28] sm:$0xff]  ;;  %v199_v31 = vld [vmem:[#allocation2 + $0x40] sm:$0xff]  ;;  %v198_v33 = vld [vmem:[#allocation2 + $0x38] sm:$0xff]  ;;  %s566_s0 = smov [#allocation5]  }
  0x11   :  { %48 = vperm.xlu0 %506, %v28_v5   ;;  %54 = vperm.xlu2 %508, %v30_v6   ;;  %v215_v32 = vld [vmem:[#allocation2 + $0xc0] sm:$0xff]  ;;  %v214_v34 = vld [vmem:[#allocation2 + $0xb8] sm:$0xff]  ;;  %v197_v35 = vld [vmem:[#allocation2 + $0x30] sm:$0xff]  ;;  %s389_s20 = sshll.u32 %s566_s0, 4  ;;  %s390_s20 = int_to_ptr.vmem [resolvable:$true] %s389_s20 }
  0x12   :  { %487 = vmatpush.msra.mxu3 %v219_v17  ;;  %472 = vmatpush.msra.mxu2 %v202_v18  ;;  %v213_v36 = vld [vmem:[#allocation2 + $0xb0] sm:$0xff]  ;;  %v196_v37 = vld [vmem:[#allocation2 + $0x28] sm:$0xff]  ;;  %v195_v39 = vld [vmem:[#allocation2 + $0x20] sm:$0xff] }
  0x13   :  { %226 = vmatpush.msra.mxu0 %v203_v13  ;;  %291 = vmatpush.msra.mxu1 %v219_v17  ;;  %v212_v38 = vld [vmem:[#allocation2 + $0xa8] sm:$0xff]  ;;  %v211_v40 = vld [vmem:[#allocation2 + $0xa0] sm:$0xff]  ;;  %v194_v41 = vld [vmem:[#allocation2 + $0x18] sm:$0xff] }
  0x14   :  { %488 = vmatpush.msra.mxu3 %v218_v19  ;;  %473 = vmatpush.msra.mxu2 %v201_v20  ;;  %v210_v42 = vld [vmem:[#allocation2 + $0x98] sm:$0xff]  ;;  %v193_v43 = vld [vmem:[#allocation2 + $0x10] sm:$0xff]  ;;  %v192_v45 = vld [vmem:[#allocation2 + $0x8] sm:$0xff] }
  0x15   :  { %227 = vmatpush.msra.mxu0 %v202_v18  ;;  %292 = vmatpush.msra.mxu1 %v218_v19  ;;  %v209_v44 = vld [vmem:[#allocation2 + $0x90] sm:$0xff]  ;;  %v208_v46 = vld [vmem:[#allocation2 + $0x88] sm:$0xff]  ;;  %v191_v47 = vld [vmem:[#allocation2] sm:$0xff] }
  0x16   :  { %489 = vmatpush.msra.mxu3 %v217_v21  ;;  %474 = vmatpush.msra.mxu2 %v200_v22  ;;  %v207_v48 = vld [vmem:[#allocation2 + $0x80] sm:$0xff] }
  0x17   :  { %228 = vmatpush.msra.mxu0 %v201_v20  ;;  %293 = vmatpush.msra.mxu1 %v217_v21 }
  0x18   :  { %57 = vperm.xlu1 %507, %v31_v14   ;;  %490 = vmatpush.msra.mxu3 %v216_v23 }
  0x19   :  { %81 = vperm.xlu0 %506, %v39_v15   ;;  %84 = vperm.xlu2 %508, %v40_v16  }
  0x1a   :  { %229 = vmatpush.msra.mxu0 %v200_v22  ;;  %294 = vmatpush.msra.mxu1 %v216_v23 }
  0x1b   :  { %475 = vmatpush.msra.mxu2 %v199_v31  ;;  %491 = vmatpush.msra.mxu3 %v215_v32 }
  0x1c   :  { %230 = vmatpush.msra.mxu0 %v199_v31  ;;  %295 = vmatpush.msra.mxu1 %v215_v32 }
  0x1d   :  { %476 = vmatpush.msra.mxu2 %v198_v33  ;;  %492 = vmatpush.msra.mxu3 %v214_v34 }
  0x1e   :  { %231 = vmatpush.msra.mxu0 %v198_v33  ;;  %296 = vmatpush.msra.mxu1 %v214_v34 }
  0x1f   :  { %477 = vmatpush.msra.mxu2 %v197_v35  ;;  %493 = vmatpush.msra.mxu3 %v213_v36 }
  0x20   :  { %87 = vperm.xlu1 %507, %v41_v24   ;;  %232 = vmatpush.msra.mxu0 %v197_v35 }
  0x21   :  { %60 = vperm.xlu0 %506, %v32_v25   ;;  %63 = vperm.xlu2 %508, %v33_v26  }
  0x22   :  { %297 = vmatpush.msra.mxu1 %v213_v36  ;;  %478 = vmatpush.msra.mxu2 %v196_v37 }
  0x23   :  { %494 = vmatpush.msra.mxu3 %v212_v38  ;;  %233 = vmatpush.msra.mxu0 %v196_v37 }
  0x24   :  { %298 = vmatpush.msra.mxu1 %v212_v38  ;;  %479 = vmatpush.msra.mxu2 %v195_v39 }
  0x25   :  { %495 = vmatpush.msra.mxu3 %v211_v40  ;;  %234 = vmatpush.msra.mxu0 %v195_v39 }
  0x26   :  { %299 = vmatpush.msra.mxu1 %v211_v40  ;;  %480 = vmatpush.msra.mxu2 %v194_v41 }
  0x27   :  { %496 = vmatpush.msra.mxu3 %v210_v42  ;;  %235 = vmatpush.msra.mxu0 %v194_v41 }
  0x28   :  { %66 = vperm.xlu1 %507, %v34_v27   ;;  %300 = vmatpush.msra.mxu1 %v210_v42 }
  0x29   :  { %90 = vperm.xlu0 %506, %v42_v28   ;;  %93 = vperm.xlu2 %508, %v43_v29  }
  0x2a   :  { %481 = vmatpush.msra.mxu2 %v193_v43  ;;  %497 = vmatpush.msra.mxu3 %v209_v44 }
  0x2b   :  { %236 = vmatpush.msra.mxu0 %v193_v43  ;;  %301 = vmatpush.msra.mxu1 %v209_v44 }
  0x2c   :  { %482 = vmatpush.msra.mxu2 %v192_v45  ;;  %498 = vmatpush.msra.mxu3 %v208_v46 }
  0x2d   :  { %237 = vmatpush.msra.mxu0 %v192_v45  ;;  %302 = vmatpush.msra.mxu1 %v208_v46 }
  0x2e   :  { %483 = vmatpush.msra.mxu2 %v191_v47  ;;  %499 = vmatpush.msra.mxu3 %v207_v48 }
  0x2f   :  { %238 = vmatpush.msra.mxu0 %v191_v47  ;;  %303 = vmatpush.msra.mxu1 %v207_v48 }
  0x31   :  { %69 = vperm.xlu0 %506, %v35_v30  }
  0x63   :  { %v79_v56 = vpop.permute.xlu2 %78 }
  0x64   :  { %vm115_vm6 = vcmp.eq.s32.totalorder %v79_v56, %v636_v50  ;;  %vm116_vm7 = vcmp.eq.s32.totalorder %v79_v56, %v639_v51 }
  0x6b   :  { %v55_v58 = vpop.permute.xlu2 %54 }
  0x6c   :  { %vm99_vm10 = vcmp.eq.s32.totalorder %v55_v58, %v636_v50  ;;  %vm100_vm12 = vcmp.eq.s32.totalorder %v55_v58, %v639_v51 }
  0x73   :  { %v85_v61 = vpop.permute.xlu2 %84 }
  0x74   :  { %vm119_vm15 = vcmp.eq.s32.totalorder %v85_v61, %v636_v50 }
  0x7a   :  { %v76_v54 = vpop.permute.xlu1 %75 }
  0x7b   :  { %v73_v52 = vpop.permute.xlu0 %72  ;;  %vm113_vm2 = vcmp.eq.s32.totalorder %v76_v54, %v636_v50  ;;  %vm114_vm3 = vcmp.eq.s32.totalorder %v76_v54, %v639_v51  ;;  %v64_v0 = vpop.permute.xlu2 %63 }
  0x7c   :  { %vm111_vm0 = vcmp.eq.s32.totalorder %v73_v52, %v636_v50  ;;  %vm112_vm1 = vcmp.eq.s32.totalorder %v73_v52, %v639_v51 }
  0x7d   :  { %444 = vmatmul.msk.f32.vlgmr.msra.gmra.mxu2 %vm111_vm0, %v565_v53  ;;  %460 = vmatmul.msk.f32.vlgmr.msra.gmra.mxu3 %vm112_vm1, %v565_v53  ;;  %vm120_vm1 = vcmp.eq.s32.totalorder %v85_v61, %v639_v51 }
  0x82   :  { %v52_v57 = vpop.permute.xlu1 %51 }
  0x83   :  { %v49_v55 = vpop.permute.xlu0 %48  ;;  %vm97_vm8 = vcmp.eq.s32.totalorder %v52_v57, %v636_v50  ;;  %vm98_vm9 = vcmp.eq.s32.totalorder %v52_v57, %v639_v51  ;;  %v94_v2 = vpop.permute.xlu2 %93 }
  0x84   :  { %vm95_vm4 = vcmp.eq.s32.totalorder %v49_v55, %v636_v50  ;;  %vm96_vm5 = vcmp.eq.s32.totalorder %v49_v55, %v639_v51 }
  0x85   :  { %436 = vmatmul.msk.f32.vlgmr.msra.gmra.mxu0 %vm95_vm4, %v565_v53  ;;  %445 = vmatmul.msk.f32.gmra.mxu2 %vm113_vm2, %v565_v53 }
  0x86   :  { %452 = vmatmul.msk.f32.vlgmr.msra.gmra.mxu1 %vm96_vm5, %v565_v53  ;;  %461 = vmatmul.msk.f32.gmra.mxu3 %vm114_vm3, %v565_v53 }
  0x8a   :  { %v58_v60 = vpop.permute.xlu1 %57 }
  0x8b   :  { %v82_v59 = vpop.permute.xlu0 %81  ;;  %vm101_vm14 = vcmp.eq.s32.totalorder %v58_v60, %v636_v50  ;;  %vm102_vm0 = vcmp.eq.s32.totalorder %v58_v60, %v639_v51 }
  0x8c   :  { %vm117_vm11 = vcmp.eq.s32.totalorder %v82_v59, %v636_v50  ;;  %vm118_vm13 = vcmp.eq.s32.totalorder %v82_v59, %v639_v51 }
  0x8d   :  { %437 = vmatmul.msk.f32.gmra.mxu0 %vm97_vm8, %v565_v53  ;;  %446 = vmatmul.msk.f32.gmra.mxu2 %vm115_vm6, %v565_v53  ;;  %vm105_vm6 = vcmp.eq.s32.totalorder %v64_v0, %v636_v50  ;;  %vm106_vm8 = vcmp.eq.s32.totalorder %v64_v0, %v639_v51 }
  0x8e   :  { %453 = vmatmul.msk.f32.gmra.mxu1 %vm98_vm9, %v565_v53  ;;  %462 = vmatmul.msk.f32.gmra.mxu3 %vm116_vm7, %v565_v53 }
  0x92   :  { %v88_v63 = vpop.permute.xlu1 %87 }
  0x93   :  { %v61_v62 = vpop.permute.xlu0 %60  ;;  %vm121_vm3 = vcmp.eq.s32.totalorder %v88_v63, %v636_v50  ;;  %vm122_vm5 = vcmp.eq.s32.totalorder %v88_v63, %v639_v51 }
  0x94   :  { %vm103_vm2 = vcmp.eq.s32.totalorder %v61_v62, %v636_v50  ;;  %vm104_vm4 = vcmp.eq.s32.totalorder %v61_v62, %v639_v51 }
  0x95   :  { %438 = vmatmul.msk.f32.gmra.mxu0 %vm99_vm10, %v565_v53  ;;  %447 = vmatmul.msk.f32.gmra.mxu2 %vm117_vm11, %v565_v53  ;;  %vm125_vm10 = vcmp.eq.s32.totalorder %v94_v2, %v636_v50 }
  0x96   :  { %454 = vmatmul.msk.f32.gmra.mxu1 %vm100_vm12, %v565_v53  ;;  %463 = vmatmul.msk.f32.gmra.mxu3 %vm118_vm13, %v565_v53  ;;  %vm126_vm12 = vcmp.eq.s32.totalorder %v94_v2, %v639_v51 }
  0x9a   :  { %v67_v3 = vpop.permute.xlu1 %66 }
  0x9b   :  { %v91_v1 = vpop.permute.xlu0 %90  ;;  %vm107_vm11 = vcmp.eq.s32.totalorder %v67_v3, %v636_v50  ;;  %vm108_vm13 = vcmp.eq.s32.totalorder %v67_v3, %v639_v51 }
  0x9c   :  { %vm123_vm7 = vcmp.eq.s32.totalorder %v91_v1, %v636_v50  ;;  %vm124_vm9 = vcmp.eq.s32.totalorder %v91_v1, %v639_v51 }
  0x9d   :  { %439 = vmatmul.msk.f32.gmra.mxu0 %vm101_vm14, %v565_v53  ;;  %448 = vmatmul.msk.f32.gmra.mxu2 %vm119_vm15, %v565_v53 }
  0x9e   :  { %455 = vmatmul.msk.f32.gmra.mxu1 %vm102_vm0, %v565_v53  ;;  %464 = vmatmul.msk.f32.gmra.mxu3 %vm120_vm1, %v565_v53 }
  0xa3   :  { %v70_v4 = vpop.permute.xlu0 %69 }
  0xa4   :  { %vm109_vm14 = vcmp.eq.s32.totalorder %v70_v4, %v636_v50  ;;  %vm110_vm15 = vcmp.eq.s32.totalorder %v70_v4, %v639_v51 }
  0xa5   :  { %440 = vmatmul.msk.f32.gmra.mxu0 %vm103_vm2, %v565_v53  ;;  %449 = vmatmul.msk.f32.gmra.mxu2 %vm121_vm3, %v565_v53 }
  0xa6   :  { %456 = vmatmul.msk.f32.gmra.mxu1 %vm104_vm4, %v565_v53  ;;  %465 = vmatmul.msk.f32.gmra.mxu3 %vm122_vm5, %v565_v53 }
  0xad   :  { %441 = vmatmul.msk.f32.gmra.mxu0 %vm105_vm6, %v565_v53  ;;  %450 = vmatmul.msk.f32.gmra.mxu2 %vm123_vm7, %v565_v53 }
  0xae   :  { %457 = vmatmul.msk.f32.gmra.mxu1 %vm106_vm8, %v565_v53  ;;  %466 = vmatmul.msk.f32.gmra.mxu3 %vm124_vm9, %v565_v53 }
  0xb5   :  { %442 = vmatmul.msk.f32.gmra.mxu0 %vm107_vm11, %v565_v53  ;;  %451 = vmatmul.msk.f32.gmra.mxu2 %vm125_vm10, %v565_v53 }
  0xb6   :  { %458 = vmatmul.msk.f32.gmra.mxu1 %vm108_vm13, %v565_v53  ;;  %467 = vmatmul.msk.f32.gmra.mxu3 %vm126_vm12, %v565_v53 }
  0xbd   :  { %443 = vmatmul.msk.f32.gmra.mxu0 %vm109_vm14, %v565_v53 }
  0xbe   :  { %459 = vmatmul.msk.f32.gmra.mxu1 %vm110_vm15, %v565_v53 }
 0x100   :  { %v264_v5 = vpop.f32.mrf.mxu2  ;;  %v329_v6 = vpop.f32.mrf.mxu3 }
 0x101   :  { %v330_v7 = vadd.f32 %v329_v6, %v264_v5 }
 0x102   :  { %v240_v8 = vpop.f32.mrf.mxu0 }
 0x103   :  { %v361_v9 = vmul.f32 11.313708, %v330_v7  ;;  %v305_v10 = vpop.f32.mrf.mxu1 }
 0x104   :  { %v306_v11 = vadd.f32 %v305_v10, %v240_v8 }
 0x105   :  { %377 = vst [vmem:[#allocation5 + $0x40] sm:$0xff] %v361_v9 }
 0x106   :  { %v353_v12 = vmul.f32 11.313708, %v306_v11 }
 0x108   :  { %369 = vst [vmem:[#allocation5] sm:$0xff] %v353_v12  ;;  %v267_v13 = vpop.f32.mrf.mxu2 }
 0x109   :  { %v332_v14 = vpop.f32.mrf.mxu3 }
 0x10a   :  { %v333_v15 = vadd.f32 %v332_v14, %v267_v13  ;;  %v243_v16 = vpop.f32.mrf.mxu0 }
 0x10b   :  { %v308_v17 = vpop.f32.mrf.mxu1 }
 0x10c   :  { %v362_v18 = vmul.f32 11.313708, %v333_v15  ;;  %v309_v19 = vadd.f32 %v308_v17, %v243_v16 }
 0x10e   :  { %378 = vst [vmem:[#allocation5 + $0x48] sm:$0xff] %v362_v18  ;;  %v354_v20 = vmul.f32 11.313708, %v309_v19 }
 0x110   :  { %370 = vst [vmem:[#allocation5 + $0x8] sm:$0xff] %v354_v20  ;;  %v270_v21 = vpop.f32.mrf.mxu2 }
 0x111   :  { %v335_v22 = vpop.f32.mrf.mxu3 }
 0x112   :  { %v336_v23 = vadd.f32 %v335_v22, %v270_v21  ;;  %v246_v24 = vpop.f32.mrf.mxu0 }
 0x113   :  { %v311_v25 = vpop.f32.mrf.mxu1 }
 0x114   :  { %v363_v26 = vmul.f32 11.313708, %v336_v23  ;;  %v312_v27 = vadd.f32 %v311_v25, %v246_v24 }
 0x116   :  { %379 = vst [vmem:[#allocation5 + $0x50] sm:$0xff] %v363_v26  ;;  %v355_v28 = vmul.f32 11.313708, %v312_v27 }
 0x118   :  { %371 = vst [vmem:[#allocation5 + $0x10] sm:$0xff] %v355_v28  ;;  %v273_v29 = vpop.f32.mrf.mxu2 }
 0x119   :  { %v338_v30 = vpop.f32.mrf.mxu3 }
 0x11a   :  { %v339_v31 = vadd.f32 %v338_v30, %v273_v29  ;;  %v249_v32 = vpop.f32.mrf.mxu0 }
 0x11b   :  { %v314_v33 = vpop.f32.mrf.mxu1 }
 0x11c   :  { %v364_v34 = vmul.f32 11.313708, %v339_v31  ;;  %v315_v35 = vadd.f32 %v314_v33, %v249_v32 }
 0x11e   :  { %380 = vst [vmem:[#allocation5 + $0x58] sm:$0xff] %v364_v34  ;;  %v356_v36 = vmul.f32 11.313708, %v315_v35 }
 0x120   :  { %372 = vst [vmem:[#allocation5 + $0x18] sm:$0xff] %v356_v36  ;;  %v276_v37 = vpop.f32.mrf.mxu2 }
 0x121   :  { %v341_v38 = vpop.f32.mrf.mxu3 }
 0x122   :  { %v342_v39 = vadd.f32 %v341_v38, %v276_v37  ;;  %v252_v40 = vpop.f32.mrf.mxu0 }
 0x123   :  { %v317_v41 = vpop.f32.mrf.mxu1 }
 0x124   :  { %v365_v42 = vmul.f32 11.313708, %v342_v39  ;;  %v318_v43 = vadd.f32 %v317_v41, %v252_v40 }
 0x126   :  { %381 = vst [vmem:[#allocation5 + $0x60] sm:$0xff] %v365_v42  ;;  %v357_v44 = vmul.f32 11.313708, %v318_v43 }
 0x128   :  { %373 = vst [vmem:[#allocation5 + $0x20] sm:$0xff] %v357_v44  ;;  %v279_v45 = vpop.f32.mrf.mxu2 }
 0x129   :  { %v344_v46 = vpop.f32.mrf.mxu3 }
 0x12a   :  { %v345_v47 = vadd.f32 %v344_v46, %v279_v45  ;;  %v255_v48 = vpop.f32.mrf.mxu0 }
 0x12b   :  { %v320_v49 = vpop.f32.mrf.mxu1 }
 0x12c   :  { %v366_v50 = vmul.f32 11.313708, %v345_v47  ;;  %v321_v51 = vadd.f32 %v320_v49, %v255_v48 }
 0x12e   :  { %382 = vst [vmem:[#allocation5 + $0x68] sm:$0xff] %v366_v50  ;;  %v358_v52 = vmul.f32 11.313708, %v321_v51 }
 0x130   :  { %374 = vst [vmem:[#allocation5 + $0x28] sm:$0xff] %v358_v52  ;;  %v282_v53 = vpop.f32.mrf.mxu2 }
 0x131   :  { %v347_v54 = vpop.f32.mrf.mxu3 }
 0x132   :  { %v348_v55 = vadd.f32 %v347_v54, %v282_v53  ;;  %v258_v56 = vpop.f32.mrf.mxu0 }
 0x133   :  { %v323_v57 = vpop.f32.mrf.mxu1 }
 0x134   :  { %v367_v58 = vmul.f32 11.313708, %v348_v55  ;;  %v324_v59 = vadd.f32 %v323_v57, %v258_v56 }
 0x136   :  { %383 = vst [vmem:[#allocation5 + $0x70] sm:$0xff] %v367_v58  ;;  %v359_v60 = vmul.f32 11.313708, %v324_v59 }
 0x138   :  { %375 = vst [vmem:[#allocation5 + $0x30] sm:$0xff] %v359_v60  ;;  %v285_v61 = vpop.f32.mrf.mxu2 }
 0x139   :  { %v350_v62 = vpop.f32.mrf.mxu3 }
 0x13a   :  { %v351_v63 = vadd.f32 %v350_v62, %v285_v61  ;;  %v261_v0 = vpop.f32.mrf.mxu0 }
 0x13b   :  { %v326_v1 = vpop.f32.mrf.mxu1 }
 0x13c   :  { %v368_v2 = vmul.f32 11.313708, %v351_v63  ;;  %v327_v3 = vadd.f32 %v326_v1, %v261_v0 }
 0x13e   :  { %384 = vst [vmem:[#allocation5 + $0x78] sm:$0xff] %v368_v2  ;;  %v360_v4 = vmul.f32 11.313708, %v327_v3 }
 0x140   :  { %376 = vst [vmem:[#allocation5 + $0x38] sm:$0xff] %v360_v4 }
 0x141   :  { %397 = dma.vmem_to_hbm [thread:$0]  %s390_s20, 2048, %s392_s23, [#allocation4], %s562_s14, %s562_s14, %s563_s15  }
 0x142   :  { %559 = dma.done.wait [#allocation4], 2048  }
 0x143   :  { %560 = vsyncadd [#allocation4], 4294965248 }
 0x144   :  { %402 = vsyncpa [#allocation3], 1 }
 0x145   :  { %403 = vsyncpa [#allocation4], 1 }

</bundles_post_ra>
